<compile_context>
chip_gen: v7x
topology: tpu7x:2x2x1
jax: 0.10.0
libtpu: 0.0.40
codegen_flags: <defaults>
</compile_context>

<pallas_src>
import jax
import jax.numpy as jnp
from jax import lax
from jax.experimental import pallas as pl
from jax.experimental.pallas import tpu as pltpu

EPS = 1e-5


def _embed_ln_kernel(tok_ref,      # SMEM (B*S,) int32   (scalar prefetch)
                     emb_hbm,      # HBM  (V, H) f32     (memory_space=pl.ANY)
                     pos_ref,      # VMEM (TS, H) f32
                     gamma_ref,    # VMEM (1, H) f32
                     beta_ref,     # VMEM (1, H) f32
                     out_ref,      # VMEM (TS, H) f32
                     gbuf,         # VMEM scratch (TS, H) f32
                     sems):        # DMA semaphores (TS,)
    b = pl.program_id(0)
    j = pl.program_id(1)
    n_seq_tiles = pl.num_programs(1)
    TS, H = gbuf.shape
    V = emb_hbm.shape[0]
    S = n_seq_tiles * TS

    base = b * S + j * TS

    # --- DMA gather of the TS embedding rows for this tile ---
    copies = []
    for r in range(TS):  # TS is a small static constant -> unrolled
        tid = tok_ref[base + r]
        tid = jnp.clip(tid, 0, V - 1)           # guard out-of-range ids
        cp = pltpu.make_async_copy(
            emb_hbm.at[pl.ds(tid, 1), :],       # (1, H) row in HBM
            gbuf.at[pl.ds(r, 1), :],            # (1, H) row in VMEM
            sems.at[r],
        )
        cp.start()
        copies.append(cp)
    for cp in copies:
        cp.wait()

    # --- add position embedding (this seq tile) ---
    x = gbuf[...] + pos_ref[...]                # (TS, H)

    # --- dropout: identity (eval mode) ---

    # --- LayerNorm over hidden dim (gamma folded into the rsqrt scale) ---
    mean = jnp.mean(x, axis=-1, keepdims=True)
    var = jnp.mean(jnp.square(x - mean), axis=-1, keepdims=True)
    scale = lax.rsqrt(var + EPS) * gamma_ref[...]          # (TS,1)*(1,H) -> (TS,H)
    out_ref[...] = ((x - mean) * scale + beta_ref[...]).astype(out_ref.dtype)


def transformer_embedding(tokens, emb_table, pos_emb, gamma, beta, *, seq_tile=None):
    """tokens: (B, S) int32 -> (B, S, H) float32"""
    B, S = tokens.shape
    V, H = emb_table.shape
    TS = S if seq_tile is None else seq_tile
    assert S % TS == 0, "seq_tile must divide max_seq_len"
    n_seq_tiles = S // TS

    tok_flat = tokens.reshape(B * S).astype(jnp.int32)     # scalar-prefetched ids
    pos2d = pos_emb.reshape(S, H).astype(jnp.float32)
    gamma2d = gamma.reshape(1, H).astype(jnp.float32)
    beta2d = beta.reshape(1, H).astype(jnp.float32)

    out_flat = pl.pallas_call(
        _embed_ln_kernel,
        out_shape=jax.ShapeDtypeStruct((B * S, H), jnp.float32),
        grid_spec=pltpu.PrefetchScalarGridSpec(
            num_scalar_prefetch=1,
            grid=(B, n_seq_tiles),
            in_specs=[
                # embedding table: leave in HBM, manual DMA-gather inside kernel
                pl.BlockSpec(memory_space=pl.ANY),
                # position embedding: per-seq-tile block
                pl.BlockSpec((TS, H), lambda b, j, tok: (j, 0)),
                # layernorm gamma / beta (tiny, resident)
                pl.BlockSpec((1, H), lambda b, j, tok: (0, 0)),
                pl.BlockSpec((1, H), lambda b, j, tok: (0, 0)),
            ],
            out_specs=pl.BlockSpec(
                (TS, H), lambda b, j, tok: (b * n_seq_tiles + j, 0)),
            scratch_shapes=[
                pltpu.VMEM((TS, H), jnp.float32),       # gathered embedding rows
                pltpu.SemaphoreType.DMA((TS,)),         # one sem per gathered row
            ],
        ),
        compiler_params=pltpu.CompilerParams(
            dimension_semantics=("parallel", "arbitrary")),
    )(tok_flat, emb_table, pos2d, gamma2d, beta2d)

    return out_flat.reshape(B, S, H)


if __name__ == "__main__":
    # config: token_vocab_size=50, hidden_dim=32, max_seq_len=8, dropout=0.1 (eval -> identity)
    B, S, H, V = 2, 8, 32, 50

    key = jax.random.PRNGKey(0)
    k_emb, k_pos, k_tok = jax.random.split(key, 3)

    # Deterministic parameter init (synthetic; mirrors the module's parameter shapes).
    emb_table = jax.random.normal(k_emb, (V, H), dtype=jnp.float32)    # nn.Embedding weight
    pos_emb = jax.random.normal(k_pos, (1, S, H), dtype=jnp.float32)   # position_embedding
    gamma = jnp.ones((H,), dtype=jnp.float32)                          # LayerNorm weight
    beta = jnp.zeros((H,), dtype=jnp.float32)                          # LayerNorm bias

    tokens = jax.random.randint(k_tok, (B, S), 0, V, dtype=jnp.int32)

    out = transformer_embedding(tokens, emb_table, pos_emb, gamma, beta)
    out = jax.block_until_ready(out)

    # sanity: compare against plain-JAX reference
    ref = emb_table[tokens] + pos_emb
    mu = ref.mean(-1, keepdims=True)
    sig = ((ref - mu) ** 2).mean(-1, keepdims=True)
    ref = (ref - mu) / jnp.sqrt(sig + EPS) * gamma + beta

    assert out.shape == (B, S, H)
    assert jnp.allclose(out, ref, atol=1e-4, rtol=1e-4)

    print("KERNEL_OK")
</pallas_src>

<mosaic_0001>
module attributes {stable_mosaic.version = 11 : i64} {
  func.func @_embed_ln_kernel(%arg0: i32, %arg1: i32, %arg2: memref<16xi32, #tpu.memory_space<smem>>, %arg3: memref<50x32xf32, #tpu.memory_space<any>>, %arg4: memref<8x32xf32, #tpu.memory_space<vmem>>, %arg5: memref<1x32xf32, #tpu.memory_space<vmem>>, %arg6: memref<1x32xf32, #tpu.memory_space<vmem>>, %arg7: memref<8x32xf32, #tpu.memory_space<vmem>>, %arg8: memref<8x32xf32, #tpu.memory_space<vmem>>, %arg9: memref<8x!tpu.dma_semaphore, #tpu.memory_space<semaphore_mem>>) attributes {dimension_semantics = [#tpu.dimension_semantics<parallel>, #tpu.dimension_semantics<arbitrary>], iteration_bounds = array<i64: 2, 1>, scalar_prefetch = 1 : i64, scratch_operands = 2 : i64, tpu.core_type = #tpu.core_type<tc>, window_params = [{}, {transform_indices = @transform_1, window_bounds = array<i64: 8, 32>}, {pipeline_mode = #tpu.pipeline_mode<synchronous>, transform_indices = @transform_2, window_bounds = array<i64: 1, 32>}, {pipeline_mode = #tpu.pipeline_mode<synchronous>, transform_indices = @transform_3, window_bounds = array<i64: 1, 32>}, {transform_indices = @transform_4, window_bounds = array<i64: 8, 32>}]} {
    %c8_i32 = arith.constant 8 : i32
    %0 = arith.muli %arg0, %c8_i32 : i32
    %c8_i32_0 = arith.constant 8 : i32
    %1 = arith.muli %arg1, %c8_i32_0 : i32
    %2 = arith.addi %0, %1 : i32
    %c0_i32 = arith.constant 0 : i32
    %3 = arith.addi %2, %c0_i32 : i32
    %4 = arith.index_cast %3 : i32 to index
    %5 = memref.load %arg2[%4] : memref<16xi32, #tpu.memory_space<smem>>
    %c0_i32_1 = arith.constant 0 : i32
    %c49_i32 = arith.constant 49 : i32
    %6 = arith.maxsi %c0_i32_1, %5 : i32
    %7 = arith.minsi %c49_i32, %6 : i32
    %c0_i32_2 = arith.constant 0 : i32
    %c0_i32_3 = arith.constant 0 : i32
    %8 = tpu.memref_slice %arg3[%7, %c0_i32_3] : memref<50x32xf32, #tpu.memory_space<any>> -> memref<1x32xf32, #tpu.memory_space<any>>
    %c0_i32_4 = arith.constant 0 : i32
    %c0_i32_5 = arith.constant 0 : i32
    %9 = tpu.memref_slice %arg8[%c0_i32_4, %c0_i32_5] : memref<8x32xf32, #tpu.memory_space<vmem>> -> memref<1x32xf32, #tpu.memory_space<vmem>>
    %10 = tpu.memref_slice %arg9[%c0_i32_2] : memref<8x!tpu.dma_semaphore, #tpu.memory_space<semaphore_mem>> -> memref<1x!tpu.dma_semaphore, #tpu.memory_space<semaphore_mem>>
    %11 = tpu.memref_squeeze %10 : memref<1x!tpu.dma_semaphore, #tpu.memory_space<semaphore_mem>> -> memref<!tpu.dma_semaphore, #tpu.memory_space<semaphore_mem>>
    tpu.enqueue_dma source(%8 : memref<1x32xf32, #tpu.memory_space<any>>) target(%9 : memref<1x32xf32, #tpu.memory_space<vmem>>) target_semaphore(%11 : memref<!tpu.dma_semaphore, #tpu.memory_space<semaphore_mem>>)
    %c1_i32 = arith.constant 1 : i32
    %12 = arith.addi %2, %c1_i32 : i32
    %13 = arith.index_cast %12 : i32 to index
    %14 = memref.load %arg2[%13] : memref<16xi32, #tpu.memory_space<smem>>
    %c0_i32_6 = arith.constant 0 : i32
    %c49_i32_7 = arith.constant 49 : i32
    %15 = arith.maxsi %c0_i32_6, %14 : i32
    %16 = arith.minsi %c49_i32_7, %15 : i32
    %c1_i32_8 = arith.constant 1 : i32
    %c0_i32_9 = arith.constant 0 : i32
    %17 = tpu.memref_slice %arg3[%16, %c0_i32_9] : memref<50x32xf32, #tpu.memory_space<any>> -> memref<1x32xf32, #tpu.memory_space<any>>
    %c1_i32_10 = arith.constant 1 : i32
    %c0_i32_11 = arith.constant 0 : i32
    %18 = tpu.memref_slice %arg8[%c1_i32_10, %c0_i32_11] : memref<8x32xf32, #tpu.memory_space<vmem>> -> memref<1x32xf32, #tpu.memory_space<vmem>>
    %19 = tpu.memref_slice %arg9[%c1_i32_8] : memref<8x!tpu.dma_semaphore, #tpu.memory_space<semaphore_mem>> -> memref<1x!tpu.dma_semaphore, #tpu.memory_space<semaphore_mem>>
    %20 = tpu.memref_squeeze %19 : memref<1x!tpu.dma_semaphore, #tpu.memory_space<semaphore_mem>> -> memref<!tpu.dma_semaphore, #tpu.memory_space<semaphore_mem>>
    tpu.enqueue_dma source(%17 : memref<1x32xf32, #tpu.memory_space<any>>) target(%18 : memref<1x32xf32, #tpu.memory_space<vmem>>) target_semaphore(%20 : memref<!tpu.dma_semaphore, #tpu.memory_space<semaphore_mem>>)
    %c2_i32 = arith.constant 2 : i32
    %21 = arith.addi %2, %c2_i32 : i32
    %22 = arith.index_cast %21 : i32 to index
    %23 = memref.load %arg2[%22] : memref<16xi32, #tpu.memory_space<smem>>
    %c0_i32_12 = arith.constant 0 : i32
    %c49_i32_13 = arith.constant 49 : i32
    %24 = arith.maxsi %c0_i32_12, %23 : i32
    %25 = arith.minsi %c49_i32_13, %24 : i32
    %c2_i32_14 = arith.constant 2 : i32
    %c0_i32_15 = arith.constant 0 : i32
    %26 = tpu.memref_slice %arg3[%25, %c0_i32_15] : memref<50x32xf32, #tpu.memory_space<any>> -> memref<1x32xf32, #tpu.memory_space<any>>
    %c2_i32_16 = arith.constant 2 : i32
    %c0_i32_17 = arith.constant 0 : i32
    %27 = tpu.memref_slice %arg8[%c2_i32_16, %c0_i32_17] : memref<8x32xf32, #tpu.memory_space<vmem>> -> memref<1x32xf32, #tpu.memory_space<vmem>>
    %28 = tpu.memref_slice %arg9[%c2_i32_14] : memref<8x!tpu.dma_semaphore, #tpu.memory_space<semaphore_mem>> -> memref<1x!tpu.dma_semaphore, #tpu.memory_space<semaphore_mem>>
    %29 = tpu.memref_squeeze %28 : memref<1x!tpu.dma_semaphore, #tpu.memory_space<semaphore_mem>> -> memref<!tpu.dma_semaphore, #tpu.memory_space<semaphore_mem>>
    tpu.enqueue_dma source(%26 : memref<1x32xf32, #tpu.memory_space<any>>) target(%27 : memref<1x32xf32, #tpu.memory_space<vmem>>) target_semaphore(%29 : memref<!tpu.dma_semaphore, #tpu.memory_space<semaphore_mem>>)
    %c3_i32 = arith.constant 3 : i32
    %30 = arith.addi %2, %c3_i32 : i32
    %31 = arith.index_cast %30 : i32 to index
    %32 = memref.load %arg2[%31] : memref<16xi32, #tpu.memory_space<smem>>
    %c0_i32_18 = arith.constant 0 : i32
    %c49_i32_19 = arith.constant 49 : i32
    %33 = arith.maxsi %c0_i32_18, %32 : i32
    %34 = arith.minsi %c49_i32_19, %33 : i32
    %c3_i32_20 = arith.constant 3 : i32
    %c0_i32_21 = arith.constant 0 : i32
    %35 = tpu.memref_slice %arg3[%34, %c0_i32_21] : memref<50x32xf32, #tpu.memory_space<any>> -> memref<1x32xf32, #tpu.memory_space<any>>
    %c3_i32_22 = arith.constant 3 : i32
    %c0_i32_23 = arith.constant 0 : i32
    %36 = tpu.memref_slice %arg8[%c3_i32_22, %c0_i32_23] : memref<8x32xf32, #tpu.memory_space<vmem>> -> memref<1x32xf32, #tpu.memory_space<vmem>>
    %37 = tpu.memref_slice %arg9[%c3_i32_20] : memref<8x!tpu.dma_semaphore, #tpu.memory_space<semaphore_mem>> -> memref<1x!tpu.dma_semaphore, #tpu.memory_space<semaphore_mem>>
    %38 = tpu.memref_squeeze %37 : memref<1x!tpu.dma_semaphore, #tpu.memory_space<semaphore_mem>> -> memref<!tpu.dma_semaphore, #tpu.memory_space<semaphore_mem>>
    tpu.enqueue_dma source(%35 : memref<1x32xf32, #tpu.memory_space<any>>) target(%36 : memref<1x32xf32, #tpu.memory_space<vmem>>) target_semaphore(%38 : memref<!tpu.dma_semaphore, #tpu.memory_space<semaphore_mem>>)
    %c4_i32 = arith.constant 4 : i32
    %39 = arith.addi %2, %c4_i32 : i32
    %40 = arith.index_cast %39 : i32 to index
    %41 = memref.load %arg2[%40] : memref<16xi32, #tpu.memory_space<smem>>
    %c0_i32_24 = arith.constant 0 : i32
    %c49_i32_25 = arith.constant 49 : i32
    %42 = arith.maxsi %c0_i32_24, %41 : i32
    %43 = arith.minsi %c49_i32_25, %42 : i32
    %c4_i32_26 = arith.constant 4 : i32
    %c0_i32_27 = arith.constant 0 : i32
    %44 = tpu.memref_slice %arg3[%43, %c0_i32_27] : memref<50x32xf32, #tpu.memory_space<any>> -> memref<1x32xf32, #tpu.memory_space<any>>
    %c4_i32_28 = arith.constant 4 : i32
    %c0_i32_29 = arith.constant 0 : i32
    %45 = tpu.memref_slice %arg8[%c4_i32_28, %c0_i32_29] : memref<8x32xf32, #tpu.memory_space<vmem>> -> memref<1x32xf32, #tpu.memory_space<vmem>>
    %46 = tpu.memref_slice %arg9[%c4_i32_26] : memref<8x!tpu.dma_semaphore, #tpu.memory_space<semaphore_mem>> -> memref<1x!tpu.dma_semaphore, #tpu.memory_space<semaphore_mem>>
    %47 = tpu.memref_squeeze %46 : memref<1x!tpu.dma_semaphore, #tpu.memory_space<semaphore_mem>> -> memref<!tpu.dma_semaphore, #tpu.memory_space<semaphore_mem>>
    tpu.enqueue_dma source(%44 : memref<1x32xf32, #tpu.memory_space<any>>) target(%45 : memref<1x32xf32, #tpu.memory_space<vmem>>) target_semaphore(%47 : memref<!tpu.dma_semaphore, #tpu.memory_space<semaphore_mem>>)
    %c5_i32 = arith.constant 5 : i32
    %48 = arith.addi %2, %c5_i32 : i32
    %49 = arith.index_cast %48 : i32 to index
    %50 = memref.load %arg2[%49] : memref<16xi32, #tpu.memory_space<smem>>
    %c0_i32_30 = arith.constant 0 : i32
    %c49_i32_31 = arith.constant 49 : i32
    %51 = arith.maxsi %c0_i32_30, %50 : i32
    %52 = arith.minsi %c49_i32_31, %51 : i32
    %c5_i32_32 = arith.constant 5 : i32
    %c0_i32_33 = arith.constant 0 : i32
    %53 = tpu.memref_slice %arg3[%52, %c0_i32_33] : memref<50x32xf32, #tpu.memory_space<any>> -> memref<1x32xf32, #tpu.memory_space<any>>
    %c5_i32_34 = arith.constant 5 : i32
    %c0_i32_35 = arith.constant 0 : i32
    %54 = tpu.memref_slice %arg8[%c5_i32_34, %c0_i32_35] : memref<8x32xf32, #tpu.memory_space<vmem>> -> memref<1x32xf32, #tpu.memory_space<vmem>>
    %55 = tpu.memref_slice %arg9[%c5_i32_32] : memref<8x!tpu.dma_semaphore, #tpu.memory_space<semaphore_mem>> -> memref<1x!tpu.dma_semaphore, #tpu.memory_space<semaphore_mem>>
    %56 = tpu.memref_squeeze %55 : memref<1x!tpu.dma_semaphore, #tpu.memory_space<semaphore_mem>> -> memref<!tpu.dma_semaphore, #tpu.memory_space<semaphore_mem>>
    tpu.enqueue_dma source(%53 : memref<1x32xf32, #tpu.memory_space<any>>) target(%54 : memref<1x32xf32, #tpu.memory_space<vmem>>) target_semaphore(%56 : memref<!tpu.dma_semaphore, #tpu.memory_space<semaphore_mem>>)
    %c6_i32 = arith.constant 6 : i32
    %57 = arith.addi %2, %c6_i32 : i32
    %58 = arith.index_cast %57 : i32 to index
    %59 = memref.load %arg2[%58] : memref<16xi32, #tpu.memory_space<smem>>
    %c0_i32_36 = arith.constant 0 : i32
    %c49_i32_37 = arith.constant 49 : i32
    %60 = arith.maxsi %c0_i32_36, %59 : i32
    %61 = arith.minsi %c49_i32_37, %60 : i32
    %c6_i32_38 = arith.constant 6 : i32
    %c0_i32_39 = arith.constant 0 : i32
    %62 = tpu.memref_slice %arg3[%61, %c0_i32_39] : memref<50x32xf32, #tpu.memory_space<any>> -> memref<1x32xf32, #tpu.memory_space<any>>
    %c6_i32_40 = arith.constant 6 : i32
    %c0_i32_41 = arith.constant 0 : i32
    %63 = tpu.memref_slice %arg8[%c6_i32_40, %c0_i32_41] : memref<8x32xf32, #tpu.memory_space<vmem>> -> memref<1x32xf32, #tpu.memory_space<vmem>>
    %64 = tpu.memref_slice %arg9[%c6_i32_38] : memref<8x!tpu.dma_semaphore, #tpu.memory_space<semaphore_mem>> -> memref<1x!tpu.dma_semaphore, #tpu.memory_space<semaphore_mem>>
    %65 = tpu.memref_squeeze %64 : memref<1x!tpu.dma_semaphore, #tpu.memory_space<semaphore_mem>> -> memref<!tpu.dma_semaphore, #tpu.memory_space<semaphore_mem>>
    tpu.enqueue_dma source(%62 : memref<1x32xf32, #tpu.memory_space<any>>) target(%63 : memref<1x32xf32, #tpu.memory_space<vmem>>) target_semaphore(%65 : memref<!tpu.dma_semaphore, #tpu.memory_space<semaphore_mem>>)
    %c7_i32 = arith.constant 7 : i32
    %66 = arith.addi %2, %c7_i32 : i32
    %67 = arith.index_cast %66 : i32 to index
    %68 = memref.load %arg2[%67] : memref<16xi32, #tpu.memory_space<smem>>
    %c0_i32_42 = arith.constant 0 : i32
    %c49_i32_43 = arith.constant 49 : i32
    %69 = arith.maxsi %c0_i32_42, %68 : i32
    %70 = arith.minsi %c49_i32_43, %69 : i32
    %c7_i32_44 = arith.constant 7 : i32
    %c0_i32_45 = arith.constant 0 : i32
    %71 = tpu.memref_slice %arg3[%70, %c0_i32_45] : memref<50x32xf32, #tpu.memory_space<any>> -> memref<1x32xf32, #tpu.memory_space<any>>
    %c7_i32_46 = arith.constant 7 : i32
    %c0_i32_47 = arith.constant 0 : i32
    %72 = tpu.memref_slice %arg8[%c7_i32_46, %c0_i32_47] : memref<8x32xf32, #tpu.memory_space<vmem>> -> memref<1x32xf32, #tpu.memory_space<vmem>>
    %73 = tpu.memref_slice %arg9[%c7_i32_44] : memref<8x!tpu.dma_semaphore, #tpu.memory_space<semaphore_mem>> -> memref<1x!tpu.dma_semaphore, #tpu.memory_space<semaphore_mem>>
    %74 = tpu.memref_squeeze %73 : memref<1x!tpu.dma_semaphore, #tpu.memory_space<semaphore_mem>> -> memref<!tpu.dma_semaphore, #tpu.memory_space<semaphore_mem>>
    tpu.enqueue_dma source(%71 : memref<1x32xf32, #tpu.memory_space<any>>) target(%72 : memref<1x32xf32, #tpu.memory_space<vmem>>) target_semaphore(%74 : memref<!tpu.dma_semaphore, #tpu.memory_space<semaphore_mem>>)
    %c0_i32_48 = arith.constant 0 : i32
    %c0_i32_49 = arith.constant 0 : i32
    %75 = tpu.memref_slice %arg3[%7, %c0_i32_49] : memref<50x32xf32, #tpu.memory_space<any>> -> memref<1x32xf32, #tpu.memory_space<any>>
    %c0_i32_50 = arith.constant 0 : i32
    %c0_i32_51 = arith.constant 0 : i32
    %76 = tpu.memref_slice %arg8[%c0_i32_50, %c0_i32_51] : memref<8x32xf32, #tpu.memory_space<vmem>> -> memref<1x32xf32, #tpu.memory_space<vmem>>
    %77 = tpu.memref_slice %arg9[%c0_i32_48] : memref<8x!tpu.dma_semaphore, #tpu.memory_space<semaphore_mem>> -> memref<1x!tpu.dma_semaphore, #tpu.memory_space<semaphore_mem>>
    %78 = tpu.memref_squeeze %77 : memref<1x!tpu.dma_semaphore, #tpu.memory_space<semaphore_mem>> -> memref<!tpu.dma_semaphore, #tpu.memory_space<semaphore_mem>>
    tpu.wait_dma2 semaphore(%78 : memref<!tpu.dma_semaphore, #tpu.memory_space<semaphore_mem>>) src(%75 : memref<1x32xf32, #tpu.memory_space<any>>) dst(%76 : memref<1x32xf32, #tpu.memory_space<vmem>>)
    %c1_i32_52 = arith.constant 1 : i32
    %c0_i32_53 = arith.constant 0 : i32
    %79 = tpu.memref_slice %arg3[%16, %c0_i32_53] : memref<50x32xf32, #tpu.memory_space<any>> -> memref<1x32xf32, #tpu.memory_space<any>>
    %c1_i32_54 = arith.constant 1 : i32
    %c0_i32_55 = arith.constant 0 : i32
    %80 = tpu.memref_slice %arg8[%c1_i32_54, %c0_i32_55] : memref<8x32xf32, #tpu.memory_space<vmem>> -> memref<1x32xf32, #tpu.memory_space<vmem>>
    %81 = tpu.memref_slice %arg9[%c1_i32_52] : memref<8x!tpu.dma_semaphore, #tpu.memory_space<semaphore_mem>> -> memref<1x!tpu.dma_semaphore, #tpu.memory_space<semaphore_mem>>
    %82 = tpu.memref_squeeze %81 : memref<1x!tpu.dma_semaphore, #tpu.memory_space<semaphore_mem>> -> memref<!tpu.dma_semaphore, #tpu.memory_space<semaphore_mem>>
    tpu.wait_dma2 semaphore(%82 : memref<!tpu.dma_semaphore, #tpu.memory_space<semaphore_mem>>) src(%79 : memref<1x32xf32, #tpu.memory_space<any>>) dst(%80 : memref<1x32xf32, #tpu.memory_space<vmem>>)
    %c2_i32_56 = arith.constant 2 : i32
    %c0_i32_57 = arith.constant 0 : i32
    %83 = tpu.memref_slice %arg3[%25, %c0_i32_57] : memref<50x32xf32, #tpu.memory_space<any>> -> memref<1x32xf32, #tpu.memory_space<any>>
    %c2_i32_58 = arith.constant 2 : i32
    %c0_i32_59 = arith.constant 0 : i32
    %84 = tpu.memref_slice %arg8[%c2_i32_58, %c0_i32_59] : memref<8x32xf32, #tpu.memory_space<vmem>> -> memref<1x32xf32, #tpu.memory_space<vmem>>
    %85 = tpu.memref_slice %arg9[%c2_i32_56] : memref<8x!tpu.dma_semaphore, #tpu.memory_space<semaphore_mem>> -> memref<1x!tpu.dma_semaphore, #tpu.memory_space<semaphore_mem>>
    %86 = tpu.memref_squeeze %85 : memref<1x!tpu.dma_semaphore, #tpu.memory_space<semaphore_mem>> -> memref<!tpu.dma_semaphore, #tpu.memory_space<semaphore_mem>>
    tpu.wait_dma2 semaphore(%86 : memref<!tpu.dma_semaphore, #tpu.memory_space<semaphore_mem>>) src(%83 : memref<1x32xf32, #tpu.memory_space<any>>) dst(%84 : memref<1x32xf32, #tpu.memory_space<vmem>>)
    %c3_i32_60 = arith.constant 3 : i32
    %c0_i32_61 = arith.constant 0 : i32
    %87 = tpu.memref_slice %arg3[%34, %c0_i32_61] : memref<50x32xf32, #tpu.memory_space<any>> -> memref<1x32xf32, #tpu.memory_space<any>>
    %c3_i32_62 = arith.constant 3 : i32
    %c0_i32_63 = arith.constant 0 : i32
    %88 = tpu.memref_slice %arg8[%c3_i32_62, %c0_i32_63] : memref<8x32xf32, #tpu.memory_space<vmem>> -> memref<1x32xf32, #tpu.memory_space<vmem>>
    %89 = tpu.memref_slice %arg9[%c3_i32_60] : memref<8x!tpu.dma_semaphore, #tpu.memory_space<semaphore_mem>> -> memref<1x!tpu.dma_semaphore, #tpu.memory_space<semaphore_mem>>
    %90 = tpu.memref_squeeze %89 : memref<1x!tpu.dma_semaphore, #tpu.memory_space<semaphore_mem>> -> memref<!tpu.dma_semaphore, #tpu.memory_space<semaphore_mem>>
    tpu.wait_dma2 semaphore(%90 : memref<!tpu.dma_semaphore, #tpu.memory_space<semaphore_mem>>) src(%87 : memref<1x32xf32, #tpu.memory_space<any>>) dst(%88 : memref<1x32xf32, #tpu.memory_space<vmem>>)
    %c4_i32_64 = arith.constant 4 : i32
    %c0_i32_65 = arith.constant 0 : i32
    %91 = tpu.memref_slice %arg3[%43, %c0_i32_65] : memref<50x32xf32, #tpu.memory_space<any>> -> memref<1x32xf32, #tpu.memory_space<any>>
    %c4_i32_66 = arith.constant 4 : i32
    %c0_i32_67 = arith.constant 0 : i32
    %92 = tpu.memref_slice %arg8[%c4_i32_66, %c0_i32_67] : memref<8x32xf32, #tpu.memory_space<vmem>> -> memref<1x32xf32, #tpu.memory_space<vmem>>
    %93 = tpu.memref_slice %arg9[%c4_i32_64] : memref<8x!tpu.dma_semaphore, #tpu.memory_space<semaphore_mem>> -> memref<1x!tpu.dma_semaphore, #tpu.memory_space<semaphore_mem>>
    %94 = tpu.memref_squeeze %93 : memref<1x!tpu.dma_semaphore, #tpu.memory_space<semaphore_mem>> -> memref<!tpu.dma_semaphore, #tpu.memory_space<semaphore_mem>>
    tpu.wait_dma2 semaphore(%94 : memref<!tpu.dma_semaphore, #tpu.memory_space<semaphore_mem>>) src(%91 : memref<1x32xf32, #tpu.memory_space<any>>) dst(%92 : memref<1x32xf32, #tpu.memory_space<vmem>>)
    %c5_i32_68 = arith.constant 5 : i32
    %c0_i32_69 = arith.constant 0 : i32
    %95 = tpu.memref_slice %arg3[%52, %c0_i32_69] : memref<50x32xf32, #tpu.memory_space<any>> -> memref<1x32xf32, #tpu.memory_space<any>>
    %c5_i32_70 = arith.constant 5 : i32
    %c0_i32_71 = arith.constant 0 : i32
    %96 = tpu.memref_slice %arg8[%c5_i32_70, %c0_i32_71] : memref<8x32xf32, #tpu.memory_space<vmem>> -> memref<1x32xf32, #tpu.memory_space<vmem>>
    %97 = tpu.memref_slice %arg9[%c5_i32_68] : memref<8x!tpu.dma_semaphore, #tpu.memory_space<semaphore_mem>> -> memref<1x!tpu.dma_semaphore, #tpu.memory_space<semaphore_mem>>
    %98 = tpu.memref_squeeze %97 : memref<1x!tpu.dma_semaphore, #tpu.memory_space<semaphore_mem>> -> memref<!tpu.dma_semaphore, #tpu.memory_space<semaphore_mem>>
    tpu.wait_dma2 semaphore(%98 : memref<!tpu.dma_semaphore, #tpu.memory_space<semaphore_mem>>) src(%95 : memref<1x32xf32, #tpu.memory_space<any>>) dst(%96 : memref<1x32xf32, #tpu.memory_space<vmem>>)
    %c6_i32_72 = arith.constant 6 : i32
    %c0_i32_73 = arith.constant 0 : i32
    %99 = tpu.memref_slice %arg3[%61, %c0_i32_73] : memref<50x32xf32, #tpu.memory_space<any>> -> memref<1x32xf32, #tpu.memory_space<any>>
    %c6_i32_74 = arith.constant 6 : i32
    %c0_i32_75 = arith.constant 0 : i32
    %100 = tpu.memref_slice %arg8[%c6_i32_74, %c0_i32_75] : memref<8x32xf32, #tpu.memory_space<vmem>> -> memref<1x32xf32, #tpu.memory_space<vmem>>
    %101 = tpu.memref_slice %arg9[%c6_i32_72] : memref<8x!tpu.dma_semaphore, #tpu.memory_space<semaphore_mem>> -> memref<1x!tpu.dma_semaphore, #tpu.memory_space<semaphore_mem>>
    %102 = tpu.memref_squeeze %101 : memref<1x!tpu.dma_semaphore, #tpu.memory_space<semaphore_mem>> -> memref<!tpu.dma_semaphore, #tpu.memory_space<semaphore_mem>>
    tpu.wait_dma2 semaphore(%102 : memref<!tpu.dma_semaphore, #tpu.memory_space<semaphore_mem>>) src(%99 : memref<1x32xf32, #tpu.memory_space<any>>) dst(%100 : memref<1x32xf32, #tpu.memory_space<vmem>>)
    %c7_i32_76 = arith.constant 7 : i32
    %c0_i32_77 = arith.constant 0 : i32
    %103 = tpu.memref_slice %arg3[%70, %c0_i32_77] : memref<50x32xf32, #tpu.memory_space<any>> -> memref<1x32xf32, #tpu.memory_space<any>>
    %c7_i32_78 = arith.constant 7 : i32
    %c0_i32_79 = arith.constant 0 : i32
    %104 = tpu.memref_slice %arg8[%c7_i32_78, %c0_i32_79] : memref<8x32xf32, #tpu.memory_space<vmem>> -> memref<1x32xf32, #tpu.memory_space<vmem>>
    %105 = tpu.memref_slice %arg9[%c7_i32_76] : memref<8x!tpu.dma_semaphore, #tpu.memory_space<semaphore_mem>> -> memref<1x!tpu.dma_semaphore, #tpu.memory_space<semaphore_mem>>
    %106 = tpu.memref_squeeze %105 : memref<1x!tpu.dma_semaphore, #tpu.memory_space<semaphore_mem>> -> memref<!tpu.dma_semaphore, #tpu.memory_space<semaphore_mem>>
    tpu.wait_dma2 semaphore(%106 : memref<!tpu.dma_semaphore, #tpu.memory_space<semaphore_mem>>) src(%103 : memref<1x32xf32, #tpu.memory_space<any>>) dst(%104 : memref<1x32xf32, #tpu.memory_space<vmem>>)
    %c0 = arith.constant 0 : index
    %c0_80 = arith.constant 0 : index
    %107 = vector.load %arg8[%c0, %c0_80] : memref<8x32xf32, #tpu.memory_space<vmem>>, vector<8x32xf32>
    %c0_81 = arith.constant 0 : index
    %c0_82 = arith.constant 0 : index
    %108 = vector.load %arg4[%c0_81, %c0_82] : memref<8x32xf32, #tpu.memory_space<vmem>>, vector<8x32xf32>
    %109 = arith.addf %107, %108 : vector<8x32xf32>
    %cst = arith.constant dense<0.000000e+00> : vector<8xf32>
    %110 = vector.multi_reduction <add>, %109, %cst [1] : vector<8x32xf32> to vector<8xf32>
    %111 = vector.shape_cast %110 : vector<8xf32> to vector<8x1xf32>
    %cst_83 = arith.constant 3.200000e+01 : f32
    %112 = vector.broadcast %cst_83 : f32 to vector<8x1xf32>
    %113 = arith.divf %111, %112 : vector<8x1xf32>
    %114 = vector.broadcast %113 : vector<8x1xf32> to vector<8x32xf32>
    %115 = arith.subf %109, %114 : vector<8x32xf32>
    %116 = arith.mulf %115, %115 : vector<8x32xf32>
    %cst_84 = arith.constant dense<0.000000e+00> : vector<8xf32>
    %117 = vector.multi_reduction <add>, %116, %cst_84 [1] : vector<8x32xf32> to vector<8xf32>
    %118 = vector.shape_cast %117 : vector<8xf32> to vector<8x1xf32>
    %cst_85 = arith.constant 3.200000e+01 : f32
    %119 = vector.broadcast %cst_85 : f32 to vector<8x1xf32>
    %120 = arith.divf %118, %119 : vector<8x1xf32>
    %cst_86 = arith.constant 9.99999974E-6 : f32
    %121 = vector.broadcast %cst_86 : f32 to vector<8x1xf32>
    %122 = arith.addf %120, %121 : vector<8x1xf32>
    %123 = math.rsqrt %122 : vector<8x1xf32>
    %c0_87 = arith.constant 0 : index
    %c0_88 = arith.constant 0 : index
    %124 = vector.load %arg5[%c0_87, %c0_88] : memref<1x32xf32, #tpu.memory_space<vmem>>, vector<1x32xf32>
    %125 = vector.broadcast %123 : vector<8x1xf32> to vector<8x32xf32>
    %126 = vector.broadcast %124 : vector<1x32xf32> to vector<8x32xf32>
    %127 = arith.mulf %125, %126 : vector<8x32xf32>
    %128 = vector.broadcast %113 : vector<8x1xf32> to vector<8x32xf32>
    %129 = arith.subf %109, %128 : vector<8x32xf32>
    %130 = arith.mulf %129, %127 : vector<8x32xf32>
    %c0_89 = arith.constant 0 : index
    %c0_90 = arith.constant 0 : index
    %131 = vector.load %arg6[%c0_89, %c0_90] : memref<1x32xf32, #tpu.memory_space<vmem>>, vector<1x32xf32>
    %132 = vector.broadcast %131 : vector<1x32xf32> to vector<8x32xf32>
    %133 = arith.addf %130, %132 : vector<8x32xf32>
    %c0_91 = arith.constant 0 : index
    %c0_92 = arith.constant 0 : index
    %134 = vector.load %arg7[%c0_91, %c0_92] : memref<8x32xf32, #tpu.memory_space<vmem>>, vector<8x32xf32>
    tpu.vector_store %arg7[%c0_91, %c0_92], %133 {strides = array<i32>} : memref<8x32xf32, #tpu.memory_space<vmem>>, vector<8x32xf32>,
    return
  }
  func.func @transform_1(%arg0: i32, %arg1: i32, %arg2: memref<16xi32, #tpu.memory_space<smem>>) -> (i32, i32) {
    %c0_i32 = arith.constant 0 : i32
    %c0_i32_0 = arith.constant 0 : i32
    return %arg1, %c0_i32 : i32, i32
  }
  func.func @transform_2(%arg0: i32, %arg1: i32, %arg2: memref<16xi32, #tpu.memory_space<smem>>) -> (i32, i32) {
    %c0_i32 = arith.constant 0 : i32
    %c0_i32_0 = arith.constant 0 : i32
    %c0_i32_1 = arith.constant 0 : i32
    return %c0_i32, %c0_i32_0 : i32, i32
  }
  func.func @transform_3(%arg0: i32, %arg1: i32, %arg2: memref<16xi32, #tpu.memory_space<smem>>) -> (i32, i32) {
    %c0_i32 = arith.constant 0 : i32
    %c0_i32_0 = arith.constant 0 : i32
    %c0_i32_1 = arith.constant 0 : i32
    return %c0_i32, %c0_i32_0 : i32, i32
  }
  func.func @transform_4(%arg0: i32, %arg1: i32, %arg2: memref<16xi32, #tpu.memory_space<smem>>) -> (i32, i32) {
    %c1_i32 = arith.constant 1 : i32
    %0 = arith.muli %arg0, %c1_i32 : i32
    %1 = arith.addi %0, %arg1 : i32
    %c0_i32 = arith.constant 0 : i32
    %c0_i32_0 = arith.constant 0 : i32
    return %1, %c0_i32 : i32, i32
  }
}

</mosaic_0001>

<bundles_post_ra>
// kernel: tpu_custom_call.1
= control target key start
LH: loop header
LB: loop body
LE: loop exit
PB: predicated region body
PF: predicated region fallthrough
CT: control target
= control target key end

     0   :  { %s1346_s0 = inlined_call_operand.vmem [shape: s32[16], index: 0, kind: input, shape index: {}]   ;;  %s1347_s1 = inlined_call_operand.vmem [shape: f32[50,32], index: 1, kind: input, shape index: {}]   ;;  %s1348_s2 = inlined_call_operand.vmem [shape: f32[8,32], index: 2, kind: input, shape index: {}]   ;;  %s1349_s3 = inlined_call_operand.vmem [shape: f32[1,32], index: 3, kind: input, shape index: {}]   ;;  %s1350_s4 = inlined_call_operand.vmem [shape: f32[1,32], index: 4, kind: input, shape index: {}]   ;;  %s1351_s5 = inlined_call_operand.hbm [shape: f32[16,32], index: 5, kind: output, shape index: {}]  }
   0x1   :  { %s10_s20 = sshll.u32 %s1346_s0, 4  ;;  %s11_s20 = int_to_ptr.vmem [resolvable:$true] %s10_s20 }
   0x2   :  { %s1036_s21 = scalar_lea.vmem %s11_s20, 16  ;;  %p1041_p1 = scmp.lt.s32.totalorder %s11_s20, %s11_s20 }
   0x3   :  { %p1037_p0 = scmp.ne.s32.totalorder %s11_s20, %s1036_s21  ;;  %p1042_p2 = scmp.lt.s32.totalorder %s1036_s21, %s1036_s21 }
   0x5   :  { %p1043_p3 = por %p1042_p2, %p1041_p1 }
   0x7   :  { %p1044_p4 = pnand %p1043_p3, %p1037_p0 }
   0x9   :  { %1047 = shalt.err (!%p1044_p4)  }
   0xa   :  { %s1146_s22 = smov [#allocation5]  }
   0xb   :  { %13 = dma.vmem_to_smem %s11_s20, 16, %s1146_s22, [#allocation4] }
   0xc   :  { %1100 = dma.done.wait [#allocation4], 16 }
   0xd   :  { %1101 = vsyncadd [#allocation4], 4294967280 }
   0xe   :  { %15 = sfence }
   0xf   :  { %16 = vsyncpa [#allocation7], 0 }
  0x10   :  { %18 = vsyncpa [#allocation7 + $0x1], 0  ;;  %s1181_s23 = smov 0   ;;  %s1183_s24 = smov 0  }
  0x11   :  { %s1185_s0 = smov 0   ;;  %s1187_s25 = smov 0  }
  0x12   :  { %s1189_s26 = smov 0   ;;  %s1191_s27 = smov 0  }
  0x13 LB: > { %s901_s28 = sadd.s32 4294967295, %s1144_s27   ;;  %s902_s29 = sadd.s32 4294967294, %s1144_s27   ;;  %s1144_s27 = sphi %s1191_s27, %s24_s27   ;;  %s1140_s26 = sphi %s1189_s26, %s1358_s26   ;;  %s1136_s25 = sphi %s1187_s25, %s1357_s25   ;;  %s1132_s0 = sphi %s1185_s0, %s1356_s0   ;;  %s1128_s24 = sphi %s1183_s24, %s1355_s24   ;;  %s1124_s23 = sphi %s1181_s23, %s1354_s23  }
  0x14   : > { %s36_s30 = sadd.s32 1, %s1140_s26  ;;  %s113_s6 = sadd.s32 1, %s1132_s0 }
  0x15   : > { %p38_p5 = scmp.ge.s32.totalorder %s36_s30, 2  ;;  %p123_p6 = scmp.ne.s32.totalorder %s1132_s0, %s1128_s24 }
  0x16   : > { %p124_p7 = scmp.eq.s32.totalorder %s901_s28, 1  ;;  %p129_p8 = scmp.ne.s32.totalorder %s1128_s24, %s1124_s23 }
  0x17   : > { %s1360_s30 = smov (%p38_p5, %s36_s30), 0  ;;  %p130_p10 = scmp.eq.s32.totalorder %s902_s29, 1 }
  0x18   : > { %p1221_p9 = por %p124_p7, %p123_p6  ;;  %s110_s8 = ssub.s32 %s1140_s26, %s1360_s30 }
  0x19   : > { %p905_p11 = scmp.ge.s32.totalorder %s1144_s27, 1  ;;  %p111_p12 = scmp.eq.s32.totalorder %s110_s8, 0 }
  0x1a   : > { %p1228_p13 = por %p130_p10, %p129_p8  ;;  %p161_p0 = scmp.lt.s32.totalorder %s1144_s27, 3 }
  0x1b   : > { %s1234_s10 = scalar_select %p111_p12, %s1132_s0, %s113_s6  }
  0x1c   : > { %p162_p1 = pnand %p905_p11, %p161_p0 }
  0x1d   : > { %s181_s11 = sand.u32 (!%p162_p1), 1, %s1128_s24   ;;  %s1238_s12 = sshll.u32 (!%p162_p1), %s1136_s25, 3 }
  0x1e   : > { %165 = sbr.rel (%p162_p1) target bundleno = 489 (0x1e9), region = 32  ;;  %s1242_s13 = sshll.u32 (!%p162_p1), %s181_s11, 3 }
  0x1f   : > { %s192_s14 = sld [smem:[#allocation5 + %s1238_s12]] (!%p162_p1)  ;;  %s183_s18 = scalar_lea.vmem (!%p162_p1), [#allocation6], %s1242_s13 }
  0x25   : > { %p193_p2 = scmp.gt.s32.totalorder %s192_s14, 0  ;;  %p908_p3 = scmp.lt.s32.totalorder %s192_s14, 49 }
  0x27   : > { %s1362_s14 = smov (!%p193_p2, %s192_s14), 0 }
  0x28   : > { %s1364_s14 = smov (!%p908_p3, %s1362_s14), 49 }
  0x29   : > { %s197_s17 = scalar_lea.vmem %s1347_s1, %s1364_s14 }
  0x2a   : > { %v215_v0 = vld [vmem:[%s197_s17] sm:$0x1] }
  0x2b   : > { %216 = vst [vmem:[#allocation2] sm:$0x1] %v215_v0 }
  0x2c   : > { %241 = vsyncadd [#allocation3], 16  ;;  %s242_s19 = sadd.s32 1, %s1238_s12 }
  0x2d   : > { %s243_s20 = sld [smem:[#allocation5 + %s242_s19]] }
  0x33   : > { %p244_p4 = scmp.gt.s32.totalorder %s243_s20, 0  ;;  %p913_p5 = scmp.lt.s32.totalorder %s243_s20, 49 }
  0x35   : > { %s1366_s20 = smov (!%p244_p4, %s243_s20), 0 }
  0x36   : > { %s1368_s20 = smov (!%p913_p5, %s1366_s20), 49 }
  0x37   : > { %s248_s28 = scalar_lea.vmem %s1347_s1, %s1368_s20 }
  0x38   : > { %v268_v1 = vld [vmem:[%s248_s28] sm:$0x1] }
  0x39   : > { %269 = vst [vmem:[#allocation2 + $0x1] sm:$0x1] %v268_v1 }
  0x3a   : > { %294 = vsyncadd [#allocation3 + $0x1], 16  ;;  %s295_s29 = sadd.s32 2, %s1238_s12 }
  0x3b   : > { %s296_s6 = sld [smem:[#allocation5 + %s295_s29]] }
  0x41   : > { %p297_p6 = scmp.gt.s32.totalorder %s296_s6, 0  ;;  %p918_p7 = scmp.lt.s32.totalorder %s296_s6, 49 }
  0x43   : > { %s1370_s6 = smov (!%p297_p6, %s296_s6), 0 }
  0x44   : > { %s1372_s6 = smov (!%p918_p7, %s1370_s6), 49 }
  0x45   : > { %s301_s15 = scalar_lea.vmem %s1347_s1, %s1372_s6 }
  0x46   : > { %v321_v2 = vld [vmem:[%s301_s15] sm:$0x1] }
  0x47   : > { %322 = vst [vmem:[#allocation2 + $0x2] sm:$0x1] %v321_v2 }
  0x48   : > { %347 = vsyncadd [#allocation3 + $0x2], 16  ;;  %s348_s16 = sadd.s32 3, %s1238_s12 }
  0x49   : > { %s349_s17 = sld [smem:[#allocation5 + %s348_s16]] }
  0x4f   : > { %p350_p8 = scmp.gt.s32.totalorder %s349_s17, 0  ;;  %p923_p10 = scmp.lt.s32.totalorder %s349_s17, 49 }
  0x51   : > { %s1374_s17 = smov (!%p350_p8, %s349_s17), 0 }
  0x52   : > { %s1376_s17 = smov (!%p923_p10, %s1374_s17), 49 }
  0x53   : > { %s354_s21 = scalar_lea.vmem %s1347_s1, %s1376_s17 }
  0x54   : > { %v374_v3 = vld [vmem:[%s354_s21] sm:$0x1] }
  0x55   : > { %375 = vst [vmem:[#allocation2 + $0x3] sm:$0x1] %v374_v3 }
  0x56   : > { %400 = vsyncadd [#allocation3 + $0x3], 16  ;;  %s401_s22 = sadd.s32 4, %s1238_s12 }
  0x57   : > { %s402_s28 = sld [smem:[#allocation5 + %s401_s22]] }
  0x5d   : > { %p403_p11 = scmp.gt.s32.totalorder %s402_s28, 0  ;;  %p928_p12 = scmp.lt.s32.totalorder %s402_s28, 49 }
  0x5f   : > { %s1378_s28 = smov (!%p403_p11, %s402_s28), 0 }
  0x60   : > { %s1380_s28 = smov (!%p928_p12, %s1378_s28), 49 }
  0x61   : > { %s407_s8 = scalar_lea.vmem %s1347_s1, %s1380_s28 }
  0x62   : > { %v427_v4 = vld [vmem:[%s407_s8] sm:$0x1] }
  0x63   : > { %428 = vst [vmem:[#allocation2 + $0x4] sm:$0x1] %v427_v4 }
  0x64   : > { %453 = vsyncadd [#allocation3 + $0x4], 16  ;;  %s454_s14 = sadd.s32 5, %s1238_s12 }
  0x65   : > { %s455_s15 = sld [smem:[#allocation5 + %s454_s14]] }
  0x6b   : > { %p456_p0 = scmp.gt.s32.totalorder %s455_s15, 0  ;;  %p933_p1 = scmp.lt.s32.totalorder %s455_s15, 49 }
  0x6d   : > { %s1382_s15 = smov (!%p456_p0, %s455_s15), 0 }
  0x6e   : > { %s1384_s15 = smov (!%p933_p1, %s1382_s15), 49 }
  0x6f   : > { %s460_s19 = scalar_lea.vmem %s1347_s1, %s1384_s15 }
  0x70   : > { %v480_v5 = vld [vmem:[%s460_s19] sm:$0x1] }
  0x71   : > { %481 = vst [vmem:[#allocation2 + $0x5] sm:$0x1] %v480_v5 }
  0x72   : > { %506 = vsyncadd [#allocation3 + $0x5], 16  ;;  %s507_s20 = sadd.s32 6, %s1238_s12 }
  0x73   : > { %s508_s21 = sld [smem:[#allocation5 + %s507_s20]] }
  0x79   : > { %p509_p2 = scmp.gt.s32.totalorder %s508_s21, 0  ;;  %p938_p3 = scmp.lt.s32.totalorder %s508_s21, 49 }
  0x7b   : > { %s1386_s21 = smov (!%p509_p2, %s508_s21), 0 }
  0x7c   : > { %s1388_s21 = smov (!%p938_p3, %s1386_s21), 49 }
  0x7d   : > { %s513_s29 = scalar_lea.vmem %s1347_s1, %s1388_s21 }
  0x7e   : > { %v533_v6 = vld [vmem:[%s513_s29] sm:$0x1] }
  0x7f   : > { %534 = vst [vmem:[#allocation2 + $0x6] sm:$0x1] %v533_v6 }
  0x80   : > { %559 = vsyncadd [#allocation3 + $0x6], 16  ;;  %s560_s6 = sadd.s32 7, %s1238_s12 }
  0x81   : > { %s561_s8 = sld [smem:[#allocation5 + %s560_s6]] }
  0x87   : > { %p562_p4 = scmp.gt.s32.totalorder %s561_s8, 0  ;;  %p943_p5 = scmp.lt.s32.totalorder %s561_s8, 49 }
  0x89   : > { %s1390_s8 = smov (!%p562_p4, %s561_s8), 0 }
  0x8a   : > { %s1392_s8 = smov (!%p943_p5, %s1390_s8), 49 }
  0x8b   : > { %s566_s16 = scalar_lea.vmem %s1347_s1, %s1392_s8 }
  0x8c   : > { %v586_v7 = vld [vmem:[%s566_s16] sm:$0x1] }
  0x8d   : > { %587 = vst [vmem:[#allocation2 + $0x7] sm:$0x1] %v586_v7 }
  0x8e   : > { %612 = vsyncadd [#allocation3 + $0x7], 16 }
  0x8f   : > { %1102 = dma.done.wait [#allocation3], 16 }
  0x90   : > { %1103 = vsyncadd [#allocation3], 4294967280 }
  0x91   : > { %1104 = dma.done.wait [#allocation3 + $0x1], 16 }
  0x92   : > { %1105 = vsyncadd [#allocation3 + $0x1], 4294967280 }
  0x93   : > { %1106 = dma.done.wait [#allocation3 + $0x2], 16 }
  0x94   : > { %1107 = vsyncadd [#allocation3 + $0x2], 4294967280 }
  0x95   : > { %1108 = dma.done.wait [#allocation3 + $0x3], 16 }
  0x96   : > { %1109 = vsyncadd [#allocation3 + $0x3], 4294967280 }
  0x97   : > { %1110 = dma.done.wait [#allocation3 + $0x4], 16 }
  0x98   : > { %1111 = vsyncadd [#allocation3 + $0x4], 4294967280 }
  0x99   : > { %1112 = dma.done.wait [#allocation3 + $0x5], 16 }
  0x9a   : > { %1113 = vsyncadd [#allocation3 + $0x5], 4294967280 }
  0x9b   : > { %1114 = dma.done.wait [#allocation3 + $0x6], 16 }
  0x9c   : > { %1115 = vsyncadd [#allocation3 + $0x6], 4294967280 }
  0x9d   : > { %1116 = dma.done.wait [#allocation3 + $0x7], 16 }
  0x9e   : > { %1117 = vsyncadd [#allocation3 + $0x7], 4294967280  ;;  %v630_v8 = vld [vmem:[#allocation2] sm:$0xff]  ;;  %vm633_vm0 = vcmask 261120   ;;  %s951_s28 = sshll.u32 %s1136_s25, 7  ;;  %s680_s29 = sshll.u32 %s183_s18, 4  ;;  %s1296_s29 = int_to_ptr.vmem [resolvable:$true] %s680_s29 }
  0x9f   : > { %v631_v9 = vld [vmem:[%s1348_s2] sm:$0xff]  ;;  %s1294_s14 = scalar_lea.hbm %s1351_s5, %s951_s28  ;;  %s666_s15 = scalar_lea.sflag [#allocation7], %s181_s11 }
  0xa0   : > { %v632_v10 = vadd.f32 %v631_v9, %v630_v8  ;;  %v948_v20 = vld [vmem:[%s1349_s3] ss:$0 sm:$0xff]  ;;  %s1048_s25 = scalar_lea.vmem %s1296_s29, 128  ;;  %s1147_s16 = smov [#allocation6]  }
  0xa1   : > { %v949_v23 = vld [vmem:[%s1350_s4] ss:$0 sm:$0xff]  ;;  %p1049_p6 = scmp.ne.s32.totalorder %s1296_s29, %s1048_s25  ;;  %s1052_s12 = sshll.u32 %s1147_s16, 4  ;;  %s1053_s12 = int_to_ptr.vmem [resolvable:$false] %s1052_s12 }
  0xa2   : > { %v634_v11 = vsel %vm633_vm0, %v632_v10, 0.0  ;;  %s1054_s17 = scalar_lea.vmem %s1053_s12, 256  ;;  %p1055_p10 = scmp.lt.s32.totalorder %s1296_s29, %s1053_s12 }
  0xa3   : > { %635 = vadd.xlane.f32.xlu0 %v634_v11  ;;  %p1050_p7 = pnand %p1049_p6, %p1221_p9  ;;  %p1056_p11 = scmp.lt.s32.totalorder %s1054_s17, %s1048_s25 }
  0xa5   : > { %p1051_p8 = pneg %p1050_p7  ;;  %p1057_p12 = por %p1056_p11, %p1055_p10 }
  0xa7   : > { %p1058_p0 = pnand %p1057_p12, %p1051_p8 }
 0x130   : > { %v636_v12 = vpop.xlane.xlu0 %635 }
 0x131   : > { %v638_v13 = vmul.f32 0.03125, %v636_v12 }
 0x133   : > { %v639_v14 = vsub.f32 %v632_v10, %v638_v13 }
 0x135   : > { %v640_v15 = vmul.f32 %v639_v14, %v639_v14 }
 0x137   : > { %v641_v16 = vsel %vm633_vm0, %v640_v15, 0.0 }
 0x138   : > { %642 = vadd.xlane.f32.xlu0 %v641_v16 }
 0x1c5   : > { %v643_v17 = vpop.xlane.xlu0 %642 }
 0x1c6   : > { %v644_v18 = vmul.f32 0.03125, %v643_v17 }
 0x1c8   : > { %v645_v19 = vadd.f32 1e-05, %v644_v18 }
 0x1ca   : > { %1034 = vrsqrt.f32 %v645_v19 }
 0x1d4   : > { %v1035_v21 = vpop.eup %1034 }
 0x1d5   : > { %v654_v22 = vmul.f32 %v1035_v21, %v948_v20 }
 0x1d7   : > { %v655_v24 = vmul.f32 %v654_v22, %v639_v14 }
 0x1d9   : > { %v663_v25 = vadd.f32 %v949_v23, %v655_v24 }
 0x1db   : > { %664 = vst.msk [vmem:[%s183_s18] sm:$0xff] %vm633_vm0, %v663_v25 }
 0x1dc   : > { %1061 = shalt.err (!%p1058_p0)
}
 0x1dd   : > { %s1062_s11 = scalar_lea.hbm %s1294_s14, 128  ;;  %s1066_s19 = scalar_lea.hbm %s1351_s5, 256 }
 0x1de   : > { %p1063_p1 = scmp.ne.s32.totalorder %s1294_s14, %s1062_s11  ;;  %p1067_p4 = scmp.lt.u32.totalorder %s1294_s14, %s1351_s5 }
 0x1df   : > { %p1068_p5 = scmp.lt.u32.totalorder %s1066_s19, %s1062_s11  ;;  %p1070_p7 = scmp.lt.u32.totalorder %s1062_s11, %s1294_s14 }
 0x1e0   : > { %p1064_p2 = pnand %p1063_p1, %p1221_p9 }
 0x1e1   : > { %p1069_p6 = por %p1068_p5, %p1067_p4 }
 0x1e2   : > { %p1065_p3 = pneg %p1064_p2 }
 0x1e3   : > { %p1071_p8 = por %p1070_p7, %p1069_p6 }
 0x1e5   : > { %p1072_p10 = pnand %p1071_p8, %p1065_p3 }
 0x1e7   : > { %1075 = shalt.err (!%p1072_p10)
}
 0x1e8   : > { %978 = dma.vmem_to_hbm [thread:$0]  (%p1221_p9), %s1296_s29, 128, %s1294_s14, %s666_s15  }
 0x1e9 PF: > { %p984_p11 = scmp.ge.s32.totalorder %s1144_s27, 2  ;;  %s692_s22 = sand.u32 1, %s1124_s23  }
 0x1ea   : > { %s693_s28 = scalar_lea.sflag [#allocation7], %s692_s22 }
 0x1eb   : > { %p981_p12 = pnand %p984_p11, %p1228_p13 }
 0x1ed   : > { %1119 = dma.done.wait (!%p981_p12), %s693_s28, 128  }
 0x1ee   : > { %1121 = vsyncadd (!%p981_p12), %s693_s28, 4294967168  ;;  %s24_s27 = sadd.s32 1, %s1144_s27   ;;  %s1354_s23 = smov %s1128_s24 }
 0x1ef   : > { %p21_p0 = scmp.ge.s32.totalorder %s24_s27, 4   ;;  %s1355_s24 = smov %s1132_s0 }
 0x1f0   : > { %s1356_s0 = smov %s1234_s10  ;;  %s1357_s25 = smov %s1140_s26 }
 0x1f1   : > { %s1358_s26 = smov %s1360_s30  ;;  %23 = sbr.rel (!%p21_p0) target bundleno = 19 (0x13), region = 416 }
 0x1f8   :  { %698 = vsyncpa [#allocation7], 1 }
 0x1f9   :  { %700 = vsyncpa [#allocation7 + $0x1], 1 }
 0x1fa   :  { %701 = vsyncmov [#allocation3] }
 0x1fd   :  { %s702_s7 = vpop.sfrf %701 }
 0x1fe   :  { %p954_p9 = scmp.ne.s32.totalorder %s702_s7, 0 }
 0x200   :  { %706 = shalt.err (%p954_p9)  }
 0x201   :  { %708 = vsyncmov [#allocation3 + $0x1] }
 0x204   :  { %s709_s9 = vpop.sfrf %708 }
 0x205   :  { %p955_p13 = scmp.ne.s32.totalorder %s709_s9, 0 }
 0x207   :  { %713 = shalt.err (%p955_p13)  }
 0x208   :  { %715 = vsyncmov [#allocation3 + $0x2] }
 0x20b   :  { %s716_s29 = vpop.sfrf %715 }
 0x20c   :  { %p956_p1 = scmp.ne.s32.totalorder %s716_s29, 0 }
 0x20e   :  { %720 = shalt.err (%p956_p1)  }
 0x20f   :  { %722 = vsyncmov [#allocation3 + $0x3] }
 0x212   :  { %s723_s10 = vpop.sfrf %722 }
 0x213   :  { %p957_p2 = scmp.ne.s32.totalorder %s723_s10, 0 }
 0x215   :  { %727 = shalt.err (%p957_p2)  }
 0x216   :  { %729 = vsyncmov [#allocation3 + $0x4] }
 0x219   :  { %s730_s27 = vpop.sfrf %729 }
 0x21a   :  { %p958_p3 = scmp.ne.s32.totalorder %s730_s27, 0 }
 0x21c   :  { %734 = shalt.err (%p958_p3)  }
 0x21d   :  { %736 = vsyncmov [#allocation3 + $0x5] }
 0x220   :  { %s737_s1 = vpop.sfrf %736 }
 0x221   :  { %p959_p4 = scmp.ne.s32.totalorder %s737_s1, 0 }
 0x223   :  { %741 = shalt.err (%p959_p4)  }
 0x224   :  { %743 = vsyncmov [#allocation3 + $0x6] }
 0x227   :  { %s744_s2 = vpop.sfrf %743 }
 0x228   :  { %p960_p5 = scmp.ne.s32.totalorder %s744_s2, 0 }
 0x22a   :  { %748 = shalt.err (%p960_p5)  }
 0x22b   :  { %750 = vsyncmov [#allocation3 + $0x7] }
 0x22e   :  { %s751_s3 = vpop.sfrf %750 }
 0x22f   :  { %p961_p6 = scmp.ne.s32.totalorder %s751_s3, 0 }
 0x231   :  { %755 = shalt.err (%p961_p6)  }

</bundles_post_ra>
